<compile_context>
chip_gen: v7x
topology: tpu7x:2x2x1
jax: 0.10.0
libtpu: 0.0.40
codegen_flags: <defaults>
</compile_context>

<pallas_src>
import functools

import jax
import jax.numpy as jnp
from jax import lax
from jax.experimental import pallas as pl
from jax.experimental.pallas import tpu as pltpu


def _elu(x):
    # elu(x) = x if x > 0 else exp(x) - 1   (alpha=1, matches F.elu default)
    return jnp.where(x > 0, x, jnp.exp(jnp.minimum(x, 0.0)) - 1.0)


def _gated_conv_kernel(x_ref, w3_ref, b3_ref, wg_ref, bg_ref, o_ref,
                       *, C, S_out, offsets, b_blk):
    """One block of `b_blk` images per grid step, processed one image at a time.

    x_ref : (b_blk, C, S_pad) bf16  zero-padded, spatially-flattened input
    w3_ref: (C, 9*2C)         bf16  fused im2col 3x3 weight, tap-major columns
    b3_ref: (C, 1)            f32
    wg_ref: (2C, 2C)          bf16  1x1 gate weight (cols: [elu(+acc) | elu(-acc)])
    bg_ref: (2C, 1)           f32
    o_ref : (b_blk, C, S_out) f32   output on the padded-width spatial grid
    """
    # Hoisted: weight loads and bias lane-broadcasts (re-used across the loop).
    w3 = w3_ref[...]                                             # (C, 18C) bf16
    wg = wg_ref[...]                                             # (2C, 2C) bf16
    b3b = jnp.broadcast_to(b3_ref[...], (C, S_out))              # (C, S_out)
    bgb = jnp.broadcast_to(bg_ref[...], (2 * C, S_out))          # (2C, S_out)

    # Per-image loop keeps the im2col live set at ~15 vregs regardless of b_blk
    # (vs. one fused (18C, b_blk*S_out) operand that spills for b_blk >= 4).
    for b in range(b_blk):
        xb = x_ref[b].astype(jnp.float32)                        # (C, S_pad) f32
        # concat_elu #1 computed in-kernel -> no [x, -x] staging in HBM.
        h2 = jnp.concatenate([_elu(xb), _elu(-xb)], axis=0)      # (2C, S_pad)

        # im2col: 9 lane-shifted, sublane-aligned 2C-row slices stacked on
        # sublanes; the 3x3 WN-conv is then ONE fused-K MXU matmul (K = 18C).
        # TODO(synk): if a bundle dump shows XLU/VPU saturation here, A/B against
        # writing h2 to a VMEM scratch and issuing 9 K=2C matmuls on ref slices.
        bm = jnp.concatenate([h2[:, off:off + S_out] for off in offsets],
                             axis=0).astype(jnp.bfloat16)        # (18C, S_out)
        acc = jnp.dot(w3, bm, preferred_element_type=jnp.float32) + b3b  # (C, S_out)

        # concat_elu #2, Dropout2d(p=0) -> identity, then the 1x1 gate conv as a
        # SINGLE matmul: rows [elu(acc); elu(-acc)] match wg's column ordering.
        # TODO(synk): Dropout2d with drop_prob > 0 (train mode) not implemented.
        e2 = jnp.concatenate([_elu(acc), _elu(-acc)],
                             axis=0).astype(jnp.bfloat16)        # (2C, S_out)
        g = jnp.dot(wg, e2, preferred_element_type=jnp.float32) + bgb    # (2C, S_out)

        a = g[:C]
        gate = g[C:]
        # Numerically stable sigmoid on the EUP; never overflows for very
        # negative `gate`.
        z = jnp.exp(-jnp.abs(gate))
        sig = jnp.where(gate >= 0, 1.0, z) * pl.reciprocal(1.0 + z, approx=True)
        o_ref[b] = (a * sig).astype(o_ref.dtype)                 # (C, S_out)


def gated_conv_forward(x_nchw, params, *, b_blk=None):
    """x_nchw: (N, C, H, W) float32 -> (N, C, H, W) float32."""
    N, C, H, W = x_nchw.shape

    if b_blk is None:
        # Amortize the ~0.35us fixed grid-step overhead, but keep >= 2 grid
        # steps so both v7x TensorCores get work (v5e/v6e are single-TC).
        b_blk = max(1, min(8, N // 2))
    while N % b_blk:
        b_blk -= 1

    # Widen the right zero-pad so the flat output slab H*Wp is a whole number of
    # 128-lane groups -> lane-dense, unmasked output stores.  If that would
    # inflate the row width by more than 2x, fall back to Wp = W + 2 (still
    # correct; output stores just become masked -> perf-only difference).
    Wp = W + 2
    for cand in range(W + 2, min(2 * (W + 2), W + 2 + 128) + 1):
        if (H * cand) % 128 == 0:
            Wp = cand
            break
    S_out = H * Wp
    # 1 top + 2 bottom zero rows cover the full 3x3 tap reach:
    # max flat index touched = (2*Wp + 2) + S_out - 1 < (H + 3) * Wp.
    S_pad = (H + 3) * Wp

    # Single-pass prologue: bf16 staging (halves input DMA; MXU operands are
    # bf16 anyway) + zero pad + spatial flatten.  NO [x, -x] duplication.
    # TODO(synk): fold 2+ images onto the sublane axis (16-row bf16 blocks) for
    # fully vreg-dense loads/stores once b_blk >= 2 at production batch sizes.
    xp = jnp.pad(x_nchw.astype(jnp.bfloat16),
                 ((0, 0), (0, 0), (1, 2), (1, Wp - W - 1)))      # (N, C, H+3, Wp)
    xpf = xp.reshape(N, C, S_pad)                                # (N, C, S_pad)

    # Fused im2col 3x3 weight: (C_out, 2C_in, 3, 3) -> (C_out, 9*2C_in), tap-major
    # columns matching the in-kernel stacking order (dy, dx, c_in).
    w3f = jnp.transpose(params["w3_oihw"], (0, 2, 3, 1)).reshape(C, 9 * 2 * C)
    w3f = w3f.astype(jnp.bfloat16)
    wg2d = params["wg_oihw"][:, :, 0, 0].astype(jnp.bfloat16)    # (2C, 2C)
    b3c = params["b3"].reshape(C, 1).astype(jnp.float32)
    bgc = params["bg"].reshape(2 * C, 1).astype(jnp.float32)

    offsets = tuple(dy * Wp + dx for dy in range(3) for dx in range(3))
    kernel = functools.partial(_gated_conv_kernel, C=C, S_out=S_out,
                               offsets=offsets, b_blk=b_blk)

    out_flat = pl.pallas_call(
        kernel,
        out_shape=jax.ShapeDtypeStruct((N, C, S_out), jnp.float32),
        grid_spec=pltpu.PrefetchScalarGridSpec(
            num_scalar_prefetch=0,
            grid=(N // b_blk,),
            in_specs=[
                pl.BlockSpec((b_blk, C, S_pad), lambda n: (n, 0, 0)),
                pl.BlockSpec((C, 9 * 2 * C), lambda n: (0, 0)),
                pl.BlockSpec((C, 1), lambda n: (0, 0)),
                pl.BlockSpec((2 * C, 2 * C), lambda n: (0, 0)),
                pl.BlockSpec((2 * C, 1), lambda n: (0, 0)),
            ],
            out_specs=pl.BlockSpec((b_blk, C, S_out), lambda n: (n, 0, 0)),
        ),
        # Batch blocks are independent -> parallel (v7x shards across 2 TCs).
        # Working set is <100 KiB/step; if b_blk or C/H/W are scaled up, set
        # pltpu.CompilerParams(vmem_limit_bytes=...) against the 64 MiB v7x budget.
        compiler_params=pltpu.CompilerParams(
            dimension_semantics=("parallel",)),
    )(xpf, w3f, b3c, wg2d, bgc)

    # The Wp-W scratch columns hold row-wrapped garbage; this crop is REQUIRED
    # (never consume out_flat directly).
    return out_flat.reshape(N, C, H, Wp)[:, :, :, :W]


def init_params(key, C):
    """Deterministic weight-normalized parameters (synthetic init)."""
    k1, k2, k3, k4, k5, k6 = jax.random.split(key, 6)
    # conv: WNConv2d(2C -> C, k=3);  gate: WNConv2d(2C -> 2C, k=1)
    v3 = jax.random.normal(k1, (C, 2 * C, 3, 3), jnp.float32) * 0.1
    g3 = 1.0 + 0.1 * jax.random.normal(k2, (C,), jnp.float32)
    b3 = 0.1 * jax.random.normal(k3, (C,), jnp.float32)
    vg = jax.random.normal(k4, (2 * C, 2 * C, 1, 1), jnp.float32) * 0.1
    gg = 1.0 + 0.1 * jax.random.normal(k5, (2 * C,), jnp.float32)
    bg = 0.1 * jax.random.normal(k6, (2 * C,), jnp.float32)

    def weight_norm(v, g):  # w = g * v / ||v||, norm over all dims except out-channel
        norm = jnp.sqrt(jnp.sum(v * v, axis=(1, 2, 3), keepdims=True))
        return v * (g.reshape(-1, 1, 1, 1) / norm)

    return dict(
        w3_oihw=weight_norm(v3, g3),   # (C, 2C, 3, 3)
        wg_oihw=weight_norm(vg, gg),   # (2C, 2C, 1, 1)
        b3=b3, bg=bg,
    )
    # TODO(synk): aux_channels branch (aux_conv + aux input) not wired; aux=None path only.


def reference_forward(x_nchw, params):
    """Plain-JAX NCHW reference matching the PyTorch forward."""
    C = x_nchw.shape[1]

    def concat_elu(x):
        return jax.nn.elu(jnp.concatenate([x, -x], axis=1))

    h = concat_elu(x_nchw)
    h = lax.conv_general_dilated(
        h, params["w3_oihw"], (1, 1), ((1, 1), (1, 1)),
        dimension_numbers=("NCHW", "OIHW", "NCHW"))
    h = h + params["b3"][None, :, None, None]
    h = concat_elu(h)
    h = lax.conv_general_dilated(
        h, params["wg_oihw"], (1, 1), ((0, 0), (0, 0)),
        dimension_numbers=("NCHW", "OIHW", "NCHW"))
    h = h + params["bg"][None, :, None, None]
    a, b = h[:, :C], h[:, C:]
    return a * jax.nn.sigmoid(b)


if __name__ == "__main__":
    N, C, H, W = 2, 4, 16, 16
    key = jax.random.PRNGKey(0)
    kx, kp = jax.random.split(key)
    x = jax.random.normal(kx, (N, C, H, W), jnp.float32)
    params = init_params(kp, C)

    out = jax.block_until_ready(gated_conv_forward(x, params))
    ref = jax.block_until_ready(reference_forward(x, params))

    assert out.shape == (N, C, H, W), out.shape
    # bf16 staging + bf16 MXU operands (f32 accumulate) + approx reciprocal in the
    # sigmoid vs the all-f32 reference -> loosened tolerance (expected max abs
    # err ~1-2e-2 at these value scales).
    assert jnp.allclose(out, ref, atol=5e-2, rtol=5e-2), float(jnp.max(jnp.abs(out - ref)))

    print("KERNEL_OK")
</pallas_src>

<mosaic_0001>
module attributes {stable_mosaic.version = 11 : i64} {
  func.func @_gated_conv_kernel(%arg0: i32, %arg1: memref<1x4x456xbf16, #tpu.memory_space<vmem>>, %arg2: memref<4x72xbf16, #tpu.memory_space<vmem>>, %arg3: memref<4x1xf32, #tpu.memory_space<vmem>>, %arg4: memref<8x8xbf16, #tpu.memory_space<vmem>>, %arg5: memref<8x1xf32, #tpu.memory_space<vmem>>, %arg6: memref<1x4x384xf32, #tpu.memory_space<vmem>>) attributes {dimension_semantics = [#tpu.dimension_semantics<parallel>], iteration_bounds = array<i64: 2>, scalar_prefetch = 0 : i64, scratch_operands = 0 : i64, tpu.core_type = #tpu.core_type<tc>, window_params = [{transform_indices = @transform_0, window_bounds = array<i64: 1, 4, 456>}, {pipeline_mode = #tpu.pipeline_mode<synchronous>, transform_indices = @transform_1, window_bounds = array<i64: 4, 72>}, {pipeline_mode = #tpu.pipeline_mode<synchronous>, transform_indices = @transform_2, window_bounds = array<i64: 4, 1>}, {pipeline_mode = #tpu.pipeline_mode<synchronous>, transform_indices = @transform_3, window_bounds = array<i64: 8, 8>}, {pipeline_mode = #tpu.pipeline_mode<synchronous>, transform_indices = @transform_4, window_bounds = array<i64: 8, 1>}, {transform_indices = @transform_5, window_bounds = array<i64: 1, 4, 384>}]} {
    %c0 = arith.constant 0 : index
    %c0_0 = arith.constant 0 : index
    %0 = vector.load %arg2[%c0, %c0_0] : memref<4x72xbf16, #tpu.memory_space<vmem>>, vector<4x72xbf16>
    %c0_1 = arith.constant 0 : index
    %c0_2 = arith.constant 0 : index
    %1 = vector.load %arg4[%c0_1, %c0_2] : memref<8x8xbf16, #tpu.memory_space<vmem>>, vector<8x8xbf16>
    %c0_3 = arith.constant 0 : index
    %c0_4 = arith.constant 0 : index
    %2 = vector.load %arg3[%c0_3, %c0_4] : memref<4x1xf32, #tpu.memory_space<vmem>>, vector<4x1xf32>
    %3 = vector.shape_cast %2 : vector<4x1xf32> to vector<4x1xf32>
    %4 = vector.broadcast %3 : vector<4x1xf32> to vector<4x384xf32>
    %c0_5 = arith.constant 0 : index
    %c0_6 = arith.constant 0 : index
    %5 = vector.load %arg5[%c0_5, %c0_6] : memref<8x1xf32, #tpu.memory_space<vmem>>, vector<8x1xf32>
    %6 = vector.shape_cast %5 : vector<8x1xf32> to vector<8x1xf32>
    %7 = vector.broadcast %6 : vector<8x1xf32> to vector<8x384xf32>
    %c0_7 = arith.constant 0 : index
    %c0_8 = arith.constant 0 : index
    %c0_9 = arith.constant 0 : index
    %8 = vector.load %arg1[%c0_7, %c0_8, %c0_9] : memref<1x4x456xbf16, #tpu.memory_space<vmem>>, vector<1x4x456xbf16>
    %9 = vector.shape_cast %8 : vector<1x4x456xbf16> to vector<4x456xbf16>
    %10 = arith.extf %9 : vector<4x456xbf16> to vector<4x456xf32>
    %cst = arith.constant 0.000000e+00 : f32
    %11 = vector.broadcast %cst : f32 to vector<4x456xf32>
    %12 = arith.cmpf ogt, %10, %11 : vector<4x456xf32>
    %cst_10 = arith.constant 0.000000e+00 : f32
    %13 = vector.broadcast %cst_10 : f32 to vector<4x456xf32>
    %14 = arith.minimumf %10, %13 : vector<4x456xf32>
    %15 = math.exp %14 : vector<4x456xf32>
    %cst_11 = arith.constant 1.000000e+00 : f32
    %16 = vector.broadcast %cst_11 : f32 to vector<4x456xf32>
    %17 = arith.subf %15, %16 : vector<4x456xf32>
    %18 = arith.select %12, %10, %17 : vector<4x456xi1>, vector<4x456xf32>
    %cst_12 = arith.constant 0.000000e+00 : f32
    %19 = vector.broadcast %cst_12 : f32 to vector<4x456xf32>
    %20 = arith.subf %19, %10 : vector<4x456xf32>
    %cst_13 = arith.constant 0.000000e+00 : f32
    %21 = vector.broadcast %cst_13 : f32 to vector<4x456xf32>
    %22 = arith.cmpf ogt, %20, %21 : vector<4x456xf32>
    %cst_14 = arith.constant 0.000000e+00 : f32
    %23 = vector.broadcast %cst_14 : f32 to vector<4x456xf32>
    %24 = arith.minimumf %20, %23 : vector<4x456xf32>
    %25 = math.exp %24 : vector<4x456xf32>
    %cst_15 = arith.constant 1.000000e+00 : f32
    %26 = vector.broadcast %cst_15 : f32 to vector<4x456xf32>
    %27 = arith.subf %25, %26 : vector<4x456xf32>
    %28 = arith.select %22, %20, %27 : vector<4x456xi1>, vector<4x456xf32>
    %29 = tpu.concatenate %18, %28 in 0 : vector<4x456xf32>, vector<4x456xf32> -> vector<8x456xf32>
    %30 = vector.extract_strided_slice %29 {offsets = [0, 0], sizes = [8, 384], strides = [1, 1]} : vector<8x456xf32> to vector<8x384xf32>
    %31 = vector.extract_strided_slice %29 {offsets = [0, 1], sizes = [8, 384], strides = [1, 1]} : vector<8x456xf32> to vector<8x384xf32>
    %32 = vector.extract_strided_slice %29 {offsets = [0, 2], sizes = [8, 384], strides = [1, 1]} : vector<8x456xf32> to vector<8x384xf32>
    %33 = vector.extract_strided_slice %29 {offsets = [0, 24], sizes = [8, 384], strides = [1, 1]} : vector<8x456xf32> to vector<8x384xf32>
    %34 = vector.extract_strided_slice %29 {offsets = [0, 25], sizes = [8, 384], strides = [1, 1]} : vector<8x456xf32> to vector<8x384xf32>
    %35 = vector.extract_strided_slice %29 {offsets = [0, 26], sizes = [8, 384], strides = [1, 1]} : vector<8x456xf32> to vector<8x384xf32>
    %36 = vector.extract_strided_slice %29 {offsets = [0, 48], sizes = [8, 384], strides = [1, 1]} : vector<8x456xf32> to vector<8x384xf32>
    %37 = vector.extract_strided_slice %29 {offsets = [0, 49], sizes = [8, 384], strides = [1, 1]} : vector<8x456xf32> to vector<8x384xf32>
    %38 = vector.extract_strided_slice %29 {offsets = [0, 50], sizes = [8, 384], strides = [1, 1]} : vector<8x456xf32> to vector<8x384xf32>
    %39 = tpu.concatenate %30, %31, %32, %33, %34, %35, %36, %37, %38 in 0 : vector<8x384xf32>, vector<8x384xf32>, vector<8x384xf32>, vector<8x384xf32>, vector<8x384xf32>, vector<8x384xf32>, vector<8x384xf32>, vector<8x384xf32>, vector<8x384xf32> -> vector<72x384xf32>
    %40 = arith.truncf %39 : vector<72x384xf32> to vector<72x384xbf16>
    %cst_16 = arith.constant dense<0.000000e+00> : vector<4x384xf32>
    %41 = tpu.matmul %0, %40, %cst_16 {dimension_numbers = #tpu.dot_dimension_numbers<[1], [0], [0], [1], [0, 0, 1, 1], [], []>} : vector<4x72xbf16>, vector<72x384xbf16>, vector<4x384xf32> -> vector<4x384xf32>
    %42 = arith.addf %41, %4 : vector<4x384xf32>
    %cst_17 = arith.constant 0.000000e+00 : f32
    %43 = vector.broadcast %cst_17 : f32 to vector<4x384xf32>
    %44 = arith.cmpf ogt, %42, %43 : vector<4x384xf32>
    %cst_18 = arith.constant 0.000000e+00 : f32
    %45 = vector.broadcast %cst_18 : f32 to vector<4x384xf32>
    %46 = arith.minimumf %42, %45 : vector<4x384xf32>
    %47 = math.exp %46 : vector<4x384xf32>
    %cst_19 = arith.constant 1.000000e+00 : f32
    %48 = vector.broadcast %cst_19 : f32 to vector<4x384xf32>
    %49 = arith.subf %47, %48 : vector<4x384xf32>
    %50 = arith.select %44, %42, %49 : vector<4x384xi1>, vector<4x384xf32>
    %cst_20 = arith.constant 0.000000e+00 : f32
    %51 = vector.broadcast %cst_20 : f32 to vector<4x384xf32>
    %52 = arith.subf %51, %42 : vector<4x384xf32>
    %cst_21 = arith.constant 0.000000e+00 : f32
    %53 = vector.broadcast %cst_21 : f32 to vector<4x384xf32>
    %54 = arith.cmpf ogt, %52, %53 : vector<4x384xf32>
    %cst_22 = arith.constant 0.000000e+00 : f32
    %55 = vector.broadcast %cst_22 : f32 to vector<4x384xf32>
    %56 = arith.minimumf %52, %55 : vector<4x384xf32>
    %57 = math.exp %56 : vector<4x384xf32>
    %cst_23 = arith.constant 1.000000e+00 : f32
    %58 = vector.broadcast %cst_23 : f32 to vector<4x384xf32>
    %59 = arith.subf %57, %58 : vector<4x384xf32>
    %60 = arith.select %54, %52, %59 : vector<4x384xi1>, vector<4x384xf32>
    %61 = tpu.concatenate %50, %60 in 0 : vector<4x384xf32>, vector<4x384xf32> -> vector<8x384xf32>
    %62 = arith.truncf %61 : vector<8x384xf32> to vector<8x384xbf16>
    %cst_24 = arith.constant dense<0.000000e+00> : vector<8x384xf32>
    %63 = tpu.matmul %1, %62, %cst_24 {dimension_numbers = #tpu.dot_dimension_numbers<[1], [0], [0], [1], [0, 0, 1, 1], [], []>} : vector<8x8xbf16>, vector<8x384xbf16>, vector<8x384xf32> -> vector<8x384xf32>
    %64 = arith.addf %63, %7 : vector<8x384xf32>
    %65 = vector.extract_strided_slice %64 {offsets = [0, 0], sizes = [4, 384], strides = [1, 1]} : vector<8x384xf32> to vector<4x384xf32>
    %66 = vector.extract_strided_slice %64 {offsets = [4, 0], sizes = [4, 384], strides = [1, 1]} : vector<8x384xf32> to vector<4x384xf32>
    %67 = math.absf %66 : vector<4x384xf32>
    %cst_25 = arith.constant 0.000000e+00 : f32
    %68 = vector.broadcast %cst_25 : f32 to vector<4x384xf32>
    %69 = arith.subf %68, %67 : vector<4x384xf32>
    %70 = math.exp %69 : vector<4x384xf32>
    %cst_26 = arith.constant 0.000000e+00 : f32
    %71 = vector.broadcast %cst_26 : f32 to vector<4x384xf32>
    %72 = arith.cmpf oge, %66, %71 : vector<4x384xf32>
    %cst_27 = arith.constant 1.000000e+00 : f32
    %73 = vector.broadcast %cst_27 : f32 to vector<4x384xf32>
    %74 = arith.select %72, %73, %70 : vector<4x384xi1>, vector<4x384xf32>
    %cst_28 = arith.constant 1.000000e+00 : f32
    %75 = vector.broadcast %cst_28 : f32 to vector<4x384xf32>
    %76 = arith.addf %75, %70 : vector<4x384xf32>
    %77 = tpu.reciprocal %76 {approx = true} : vector<4x384xf32> -> vector<4x384xf32>
    %78 = arith.mulf %74, %77 : vector<4x384xf32>
    %79 = arith.mulf %65, %78 : vector<4x384xf32>
    %c0_29 = arith.constant 0 : index
    %c0_30 = arith.constant 0 : index
    %c0_31 = arith.constant 0 : index
    %80 = vector.load %arg6[%c0_29, %c0_30, %c0_31] : memref<1x4x384xf32, #tpu.memory_space<vmem>>, vector<1x4x384xf32>
    %81 = vector.shape_cast %80 : vector<1x4x384xf32> to vector<4x384xf32>
    %82 = vector.shape_cast %79 : vector<4x384xf32> to vector<1x4x384xf32>
    tpu.vector_store %arg6[%c0_29, %c0_30, %c0_31], %82 {strides = array<i32>} : memref<1x4x384xf32, #tpu.memory_space<vmem>>, vector<1x4x384xf32>,
    return
  }
  func.func @transform_0(%arg0: i32) -> (i32, i32, i32) {
    %c0_i32 = arith.constant 0 : i32
    %c0_i32_0 = arith.constant 0 : i32
    %c0_i32_1 = arith.constant 0 : i32
    return %arg0, %c0_i32, %c0_i32_0 : i32, i32, i32
  }
  func.func @transform_1(%arg0: i32) -> (i32, i32) {
    %c0_i32 = arith.constant 0 : i32
    %c0_i32_0 = arith.constant 0 : i32
    %c0_i32_1 = arith.constant 0 : i32
    return %c0_i32, %c0_i32_0 : i32, i32
  }
  func.func @transform_2(%arg0: i32) -> (i32, i32) {
    %c0_i32 = arith.constant 0 : i32
    %c0_i32_0 = arith.constant 0 : i32
    %c0_i32_1 = arith.constant 0 : i32
    return %c0_i32, %c0_i32_0 : i32, i32
  }
  func.func @transform_3(%arg0: i32) -> (i32, i32) {
    %c0_i32 = arith.constant 0 : i32
    %c0_i32_0 = arith.constant 0 : i32
    %c0_i32_1 = arith.constant 0 : i32
    return %c0_i32, %c0_i32_0 : i32, i32
  }
  func.func @transform_4(%arg0: i32) -> (i32, i32) {
    %c0_i32 = arith.constant 0 : i32
    %c0_i32_0 = arith.constant 0 : i32
    %c0_i32_1 = arith.constant 0 : i32
    return %c0_i32, %c0_i32_0 : i32, i32
  }
  func.func @transform_5(%arg0: i32) -> (i32, i32, i32) {
    %c0_i32 = arith.constant 0 : i32
    %c0_i32_0 = arith.constant 0 : i32
    %c0_i32_1 = arith.constant 0 : i32
    return %arg0, %c0_i32, %c0_i32_0 : i32, i32, i32
  }
}

</mosaic_0001>

<bundles_post_ra>
// kernel: tpu_custom_call.1
= control target key start
LH: loop header
LB: loop body
LE: loop exit
PB: predicated region body
PF: predicated region fallthrough
CT: control target
= control target key end

     0   :  { %10 = vsyncpa [#allocation3], 0  ;;  %s1408_s0 = inlined_call_operand.hbm [shape: bf16[2,4,456], index: 0, kind: input, shape index: {}]   ;;  %s1409_s1 = inlined_call_operand.vmem [shape: bf16[4,72], index: 1, kind: input, shape index: {}]   ;;  %s1410_s2 = inlined_call_operand.vmem [shape: f32[4,1], index: 2, kind: input, shape index: {}]   ;;  %s1411_s3 = inlined_call_operand.vmem [shape: bf16[8,8], index: 3, kind: input, shape index: {}]   ;;  %s1412_s4 = inlined_call_operand.vmem [shape: f32[8,1], index: 4, kind: input, shape index: {}]   ;;  %s1413_s5 = inlined_call_operand.hbm [shape: f32[2,4,384], index: 5, kind: output, shape index: {}]  }
   0x1   :  { %12 = vsyncpa [#allocation3 + $0x1], 0 }
   0x2   :  { %13 = vsyncpa [#allocation4], 0 }
   0x3   :  { %15 = vsyncpa [#allocation4 + $0x1], 0  ;;  %s1168_s18 = smov 0   ;;  %s1170_s19 = smov 0  }
   0x4   :  { %s1172_s20 = smov 0   ;;  %s1174_s21 = smov 0  }
   0x5 LB: > { %s1189_s22 = sadd.s32 4294967295, %s1123_s21   ;;  %s813_s23 = sadd.s32 4294967294, %s1123_s21   ;;  %s1123_s21 = sphi %s1174_s21, %s1428_s21   ;;  %s1119_s20 = sphi %s1172_s20, %s1427_s20   ;;  %s1115_s19 = sphi %s1170_s19, %s1426_s19   ;;  %s1111_s18 = sphi %s1168_s18, %s1425_s18  }
   0x6   : > { %s1193_s24 = sadd.s32 1, %s1123_s21   ;;  %s28_s25 = sadd.s32 1, %s1119_s20 }
   0x7   : > { %s25_s26 = ssub.s32 %s1123_s21, %s1193_s24  ;;  %p35_p0 = scmp.ne.s32.totalorder %s1119_s20, %s1115_s19 }
   0x8   : > { %p26_p1 = scmp.eq.s32.totalorder %s25_s26, 0  ;;  %p36_p2 = scmp.eq.s32.totalorder %s1123_s21, 0 }
   0x9   : > { %p41_p3 = scmp.ne.s32.totalorder %s1115_s19, %s1111_s18  ;;  %p42_p4 = scmp.eq.s32.totalorder %s1189_s22, 0 }
   0xa   : > { %s1205_s27 = scalar_select %p26_p1, %s1119_s20, %s28_s25  }
   0xb   : > { %p1207_p5 = por %p36_p2, %p35_p0  ;;  %p1211_p6 = por %p42_p4, %p41_p3 }
   0xc   : > { %p149_p7 = scmp.eq.s32.totalorder %s1189_s22, 1  ;;  %p155_p8 = scmp.eq.s32.totalorder %s813_s23, 1 }
   0xd   : > { %p883_p10 = scmp.lt.s32.totalorder %s1123_s21, 2  ;;  %s187_s7 = sand.u32 1, %s1119_s20  }
   0xe   : > { %p1218_p11 = por %p149_p7, %p35_p0  ;;  %p1222_p12 = por %p155_p8, %p41_p3 }
   0xf   : > { %s840_s8 = sshll.u32 %s1123_s21, 7  ;;  %s816_s9 = sshll.u32 %s187_s7, 3 }
  0x10   : > { %s1417_s30 = scalar_select %p1218_p11, 1, 0 }
  0x11   : > { %s1418_s6 = scalar_select %p1222_p12, 1, 0 }
  0x12   : > { %s1231_s12 = scalar_lea.hbm %s1408_s0, %s840_s8  ;;  %s191_s13 = scalar_lea.vmem [#allocation2], %s816_s9 }
  0x13   : > { %s199_s14 = sshll.u32 %s191_s13, 4  ;;  %p1235_p13 = pnand %p883_p10, %p1207_p5  ;;  %s1239_s14 = int_to_ptr.vmem [resolvable:$true] %s199_s14 }
  0x14   : > { %s188_s16 = scalar_lea.sflag [#allocation3], %s187_s7  ;;  %s1027_s17 = scalar_lea.hbm %s1231_s12, 128 }
  0x15   : > { %p1028_p2 = scmp.ne.s32.totalorder %s1231_s12, %s1027_s17  ;;  %p1029_p3 = pneg %p1235_p13 }
  0x16   : > { %s1032_s26 = scalar_lea.hbm %s1408_s0, 256  ;;  %p1033_p5 = scmp.lt.u32.totalorder %s1231_s12, %s1408_s0 }
  0x17   : > { %p1030_p4 = pnand %p1029_p3, %p1028_p2  ;;  %p1034_p8 = scmp.lt.u32.totalorder %s1032_s26, %s1027_s17 }
  0x18   : > { %p1036_p9 = scmp.lt.u32.totalorder %s1027_s17, %s1231_s12 }
  0x19   : > { %p1031_p7 = pneg %p1030_p4  ;;  %p1035_p10 = por %p1034_p8, %p1033_p5 }
  0x1b   : > { %p1037_p0 = por %p1036_p9, %p1035_p10 }
  0x1d   : > { %p1038_p1 = pnand %p1037_p0, %p1031_p7 }
  0x1f   : > { %1041 = shalt.err (!%p1038_p1)
}
  0x20   : > { %s1042_s7 = scalar_lea.vmem %s1239_s14, 128  ;;  %s1125_s9 = smov [#allocation2]  }
  0x21   : > { %p1043_p2 = scmp.ne.s32.totalorder %s1239_s14, %s1042_s7  ;;  %s1047_s10 = sshll.u32 %s1125_s9, 4  ;;  %s1048_s10 = int_to_ptr.vmem [resolvable:$false] %s1047_s10 }
  0x22   : > { %s1049_s11 = scalar_lea.vmem %s1048_s10, 256  ;;  %p1050_p11 = scmp.lt.s32.totalorder %s1239_s14, %s1048_s10 }
  0x23   : > { %p1045_p4 = pnand %p1043_p2, %p1029_p3  ;;  %p1051_p5 = scmp.lt.s32.totalorder %s1049_s11, %s1042_s7 }
  0x25   : > { %p1046_p12 = pneg %p1045_p4  ;;  %p1052_p8 = por %p1051_p5, %p1050_p11 }
  0x27   : > { %p1053_p9 = pnand %p1052_p8, %p1046_p12 }
  0x29   : > { %1056 = shalt.err (!%p1053_p9)
}
  0x2a   : > { %878 = dma.hbm_to_vmem [thread:$0]  (!%p1235_p13), %s1231_s12, 128, %s1239_s14, %s188_s16  }
  0x2b   : > { %p1420_p0 = scmp.lt.s32.totalorder %s1123_s21, 3  ;;  %p1421_p1 = scmp.ge.s32.totalorder %s1123_s21, 1 }
  0x2d   : > { %p205_p3 = pnand %p1421_p1, %p1420_p0 }
  0x2e   : > { %s1273_s13 = sand.u32 (!%p205_p3), 1, %s1115_s19  }
  0x2f   : > { %208 = sbr.rel (%p205_p3) target bundleno = 747 (0x2eb), region = 40  ;;  %s820_s17 = sshll.u32 (!%p205_p3), %s1273_s13, 3 }
  0x30   : > { %s211_s23 = scalar_lea.sflag (!%p205_p3), [#allocation3], %s1273_s13  ;;  %s214_s25 = scalar_lea.vmem (!%p205_p3), [#allocation2], %s820_s17 }
  0x36   : > { %1102 = dma.done.wait (%p1211_p6), %s211_s23, 128  }
  0x37   : > { %1104 = vsyncadd (%p1211_p6), %s211_s23, 4294967168  ;;  %v256_v0 = vld [vmem:[%s214_s25] sm:$0xff]  ;;  %vm297_vm3 = vcmask 1043456   ;;  %v1126_v29 = vmov 0.0   ;;  %s1127_s29 = smov 80   ;;  %s1128_s12 = smov 126  }
  0x38   : > { %v258_v1 = vunpack.c.h.bf16 %v256_v0  ;;  %v257_v2 = vunpack.c.l.bf16 %v256_v0  ;;  %849 = vmatprep.subr.bf16.mxu1 %v1126_v29  ;;  %s1129_s14 = smov 127   ;;  %s1130_s15 = smov 104   ;;  %v1134_v36 = vmov 0   ;;  %vm1135_vm5 = vmmov 0   ;;  %v244_v38 = vld [vmem:[%s1410_s2] sm:$0xf] }
  0x39   : > { %s1131_s16 = smov 102   ;;  %s1132_s26 = smov 103   ;;  %486 = vmatprep.mubr.bf16.mxu0 %v1134_v36  ;;  %993 = vset.pattern.permute.xlu1 %v1134_v36  ;;  %vm314_vm6 = vcmask 1039360   ;;  %vm329_vm7 = vcmask 1031168   ;;  %vm344_vm8 = vcmask 850944   ;;  %vm359_vm9 = vcmask 842752  }
  0x3a   : > { %v262_v3 = vmin.f32 %v258_v1, 0.0  ;;  %v272_v4 = vsub.f32 0.0, %v258_v1  ;;  %v261_v5 = vmin.f32 %v257_v2, 0.0  ;;  %v271_v6 = vsub.f32 0.0, %v257_v2  ;;  %s1133_s28 = smov 79   ;;  %994 = vset.pattern.permute.xlu0 %v1134_v36  ;;  %859 = vmatprep.mubr.msk.bf16.mxu1 %vm1135_vm5, %v1126_v29  ;;  %s1136_s8 = smov 78  }
  0x3b   : > { %vm260_vm0 = vcmp.gt.f32.partialorder %v258_v1, 0.0  ;;  %vm259_vm1 = vcmp.gt.f32.partialorder %v257_v2, 0.0  ;;  %vm374_vm10 = vcmask 834560   ;;  %vm404_vm11 = vcmask 646144   ;;  %s729_s7 = scalar_lea.sflag [#allocation4], %s1273_s13  ;;  %p1422_p11 = scmp.ne.s32.totalorder %s1417_s30, 0 }
  0x3c   : > { %v265_v7 = vmul.f32 1.442695, %v262_v3  ;;  %v276_v8 = vmin.f32 %v272_v4, 0.0  ;;  %v263_v9 = vmul.f32 1.442695, %v261_v5  ;;  %v275_v10 = vmin.f32 %v271_v6, 0.0 }
  0x3d   : > { %vm274_vm2 = vcmp.gt.f32.partialorder %v272_v4, 0.0  ;;  %vm273_vm4 = vcmp.gt.f32.partialorder %v271_v6, 0.0  ;;  %vm389_vm12 = vcmask 654336   ;;  %vm419_vm13 = vcmask 637952  }
  0x3e   : > { %995 = vpow2.f32 %v265_v7  ;;  %v279_v11 = vmul.f32 1.442695, %v276_v8  ;;  %v277_v12 = vmul.f32 1.442695, %v275_v10  ;;  %vm441_vm14 = vcmask 588800  }
  0x3f   : > { %997 = vpow2.f32 %v263_v9 }
  0x40   : > { %999 = vpow2.f32 %v279_v11 }
  0x41   : > { %1001 = vpow2.f32 %v277_v12 }
  0x48   : > { %v996_v13 = vpop.eup %995 }
  0x49   : > { %v998_v14 = vpop.eup %997  ;;  %v822_v15 = vadd.f32 -1.0, %v996_v13 }
  0x4a   : > { %v1000_v16 = vpop.eup %999  ;;  %v821_v17 = vadd.f32 -1.0, %v998_v14 }
  0x4b   : > { %v1002_v18 = vpop.eup %1001  ;;  %v270_v19 = vsel %vm260_vm0, %v258_v1, %v822_v15  ;;  %v824_v20 = vadd.f32 -1.0, %v1000_v16 }
  0x4c   : > { %v288_v21 = vcombine.high %v270_v19, %v270_v19  ;;  %v269_v22 = vsel %vm259_vm1, %v257_v2, %v821_v17  ;;  %v823_v23 = vadd.f32 -1.0, %v1002_v18 }
  0x4d   : > { %v284_v24 = vsel %vm274_vm2, %v272_v4, %v824_v20  ;;  %v287_v25 = vcombine.high %v269_v22, %v269_v22 }
  0x4e   : > { %v294_v26 = vcombine.low %v284_v24, %v284_v24  ;;  %v301_v27 = vsel %vm297_vm3, %v288_v21, %v284_v24  ;;  %v283_v28 = vsel %vm273_vm4, %v271_v6, %v823_v23 }
  0x4f   : > { %387 = vrot.lane.b32.xlu0 %v301_v27, %s1127_s29  ;;  %v293_v30 = vcombine.low %v283_v28, %v283_v28  ;;  %v299_v31 = vsel %vm297_vm3, %v287_v25, %v283_v28 }
  0x50   : > { %v1286_v32 = vsel %vm297_vm3, %v270_v19, %v294_v26 }
  0x51   : > { %v938_v33 = vpack.i.bf16 %v1286_v32, %v299_v31  ;;  %v1290_v34 = vsel %vm297_vm3, %v269_v22, %v293_v30 }
  0x52   : > { %v933_v35 = vpack.i.bf16 %v301_v27, %v1290_v34  ;;  %v988_v37 = vpack.i.bf16 %v299_v31, %v1290_v34 }
  0x53   : > { %939 = vrot.lane.b32.xlu1 %v938_v33, %s1128_s12  ;;  %929 = vrot.lane.b32.xlu0 %v938_v33, %s1129_s14 }
  0x57   : > { %944 = vrot.lane.b32.xlu1 %v938_v33, %s1130_s15  ;;  %934 = vrot.lane.b32.xlu0 %v933_v35, %s1129_s14  ;;  %s870_s14 = smul.u32 192, %s1189_s22  ;;  %s1137_s22 = smov [#allocation5]  }
  0x58   : > { %s1061_s10 = sshll.u32 %s1137_s22, 4  ;;  %s1062_s10 = int_to_ptr.vmem [resolvable:$false] %s1061_s10 }
  0x59   : > { %s1063_s11 = scalar_lea.vmem %s1062_s10, 384 }
  0x5b   : > { %954 = vrot.lane.b32.xlu1 %v933_v35, %s1130_s15  ;;  %949 = vrot.lane.b32.xlu0 %v933_v35, %s1128_s12  ;;  %s869_s12 = smul.u32 12, %s1273_s13 }
  0x5d   : > { %s240_s15 = scalar_lea.vmem [#allocation5], %s869_s12 }
  0x5f   : > { %964 = vrot.lane.b32.xlu1 %v938_v33, %s1131_s16  ;;  %959 = vrot.lane.b32.xlu0 %v938_v33, %s1132_s26 }
  0x63   : > { %974 = vrot.lane.b32.xlu1 %v933_v35, %s1131_s16  ;;  %969 = vrot.lane.b32.xlu0 %v933_v35, %s1132_s26  ;;  %s743_s16 = sshll.u32 %s240_s15, 4  ;;  %s1366_s16 = int_to_ptr.vmem [resolvable:$true] %s743_s16 }
  0x64   : > { %s1057_s9 = scalar_lea.vmem %s1366_s16, 192  ;;  %p1064_p7 = scmp.lt.s32.totalorder %s1366_s16, %s1062_s10 }
  0x65   : > { %p1058_p6 = scmp.ne.s32.totalorder %s1366_s16, %s1057_s9  ;;  %p1065_p10 = scmp.lt.s32.totalorder %s1063_s11, %s1057_s9 }
  0x67   : > { %984 = vrot.lane.b32.xlu1 %v938_v33, %s1133_s28  ;;  %979 = vrot.lane.b32.xlu0 %v938_v33, %s1127_s29  ;;  %p1059_p12 = pnand %p1058_p6, %p1422_p11  ;;  %p1066_p2 = por %p1065_p10, %p1064_p7 }
  0x69   : > { %p1060_p13 = pneg %p1059_p12 }
  0x6b   : > { %396 = vrot.lane.b32.xlu1 %v1290_v34, %s1133_s28  ;;  %381 = vrot.lane.b32.xlu0 %v1290_v34, %s1127_s29  ;;  %p1067_p4 = pnand %p1066_p2, %p1060_p13 }
  0x6f   : > { %415 = vrot.lane.b32.xlu1 %v1286_v32, %s1136_s8  ;;  %989 = vrot.lane.b32.xlu0 %v988_v37, %s1136_s8 }
  0x73   : > { %402 = vrot.lane.b32.xlu1 %v301_v27, %s1133_s28  ;;  %417 = vrot.lane.b32.xlu0 %v301_v27, %s1136_s8  ;;  %s1364_s8 = scalar_lea.hbm %s1413_s5, %s870_s14 }
  0x77   : > { %247 = vperm.xlu1 %993, %v244_v38  }
  0xc1   : > { %v1307_v39 = vpop.permute.xlu0 %387 }
  0xc5   : > { %v940_v40 = vpop.permute.xlu1 %939  ;;  %v930_v41 = vpop.permute.xlu0 %929 }
  0xc6   : > { %v932_v42 = vunpack.i.h.bf16 %v930_v41  ;;  %v931_v43 = vunpack.i.l.bf16 %v930_v41  ;;  %v942_v44 = vunpack.i.h.bf16 %v940_v40  ;;  %v941_v45 = vunpack.i.l.bf16 %v940_v40 }
  0xc8   : > { %v316_v46 = vsel %vm314_vm6, %v931_v43, %v932_v42  ;;  %v331_v56 = vsel %vm329_vm7, %v941_v45, %v942_v44 }
  0xc9   : > { %v945_v47 = vpop.permute.xlu1 %944  ;;  %v935_v48 = vpop.permute.xlu0 %934  ;;  %v427_v49 = vpack.c.bf16 %v316_v46, %v299_v31 }
  0xca   : > { %v947_v50 = vunpack.i.h.bf16 %v945_v47  ;;  %v946_v51 = vunpack.i.l.bf16 %v945_v47  ;;  %v937_v52 = vunpack.i.h.bf16 %v935_v48  ;;  %v936_v53 = vunpack.i.l.bf16 %v935_v48 }
  0xcb   : > { %454 = vmatprep.subr.bf16.mxu0 %v427_v49 }
  0xcc   : > { %v315_v54 = vsel %vm314_vm6, %v936_v53, %v931_v43  ;;  %v317_v55 = vsel %vm314_vm6, %v932_v42, %v937_v52  ;;  %v346_v57 = vsel %vm344_vm8, %v946_v51, %v947_v50  ;;  %vm589_vm6 = vcmask 64512  }
  0xcd   : > { %v955_v58 = vpop.permute.xlu1 %954  ;;  %v950_v59 = vpop.permute.xlu0 %949  ;;  %v426_v60 = vpack.c.bf16 %v315_v54, %v1290_v34  ;;  %v428_v61 = vpack.c.bf16 %v317_v55, %v1286_v32  ;;  %v430_v62 = vpack.c.bf16 %v346_v57, %v331_v56 }
  0xce   : > { %v957_v63 = vunpack.i.h.bf16 %v955_v58  ;;  %v956_v0 = vunpack.i.l.bf16 %v955_v58  ;;  %v952_v1 = vunpack.i.h.bf16 %v950_v59  ;;  %v951_v2 = vunpack.i.l.bf16 %v950_v59 }
  0xcf   : > { %455 = vmatpush1.bf16.msra.mxu0 %v426_v60  ;;  %850 = vmatpush3.bf16.msra.mxu1 %v428_v61 }
  0xd0   : > { %456 = vmatprep.subr.bf16.mxu0 %v430_v62  ;;  %851 = vmatprep.subr.bf16.mxu1 %v1126_v29  ;;  %v330_v3 = vsel %vm329_vm7, %v951_v2, %v941_v45  ;;  %v345_v4 = vsel %vm344_vm8, %v956_v0, %v946_v51  ;;  %v332_v5 = vsel %vm329_vm7, %v942_v44, %v952_v1  ;;  %v250_v0 = vld [vmem:[%s1412_s4] sm:$0xff] }
  0xd1   : > { %v965_v6 = vpop.permute.xlu1 %964  ;;  %v960_v7 = vpop.permute.xlu0 %959  ;;  %v429_v8 = vpack.c.bf16 %v345_v4, %v330_v3  ;;  %v347_v9 = vsel %vm344_vm8, %v947_v50, %v957_v63  ;;  %v242_v63 = vld [vmem:[%s1409_s1] sm:$0x3]  ;;  %253 = vperm.xlu0 %994, %v250_v0  }
  0xd2   : > { %v967_v10 = vunpack.i.h.bf16 %v965_v6  ;;  %v966_v11 = vunpack.i.l.bf16 %v965_v6  ;;  %v962_v12 = vunpack.i.h.bf16 %v960_v7  ;;  %v961_v13 = vunpack.i.l.bf16 %v960_v7 }
  0xd3   : > { %457 = vmatpush1.bf16.msra.mxu0 %v429_v8  ;;  %v431_v14 = vpack.c.bf16 %v347_v9, %v332_v5 }
  0xd4   : > { %v361_v15 = vsel %vm359_vm9, %v961_v13, %v962_v12  ;;  %v376_v16 = vsel %vm374_vm10, %v966_v11, %v967_v10 }
  0xd5   : > { %852 = vmatpush3.bf16.msra.mxu1 %v431_v14  ;;  %v975_v17 = vpop.permute.xlu1 %974  ;;  %v970_v18 = vpop.permute.xlu0 %969  ;;  %v433_v19 = vpack.c.bf16 %v376_v16, %v361_v15 }
  0xd6   : > { %v977_v20 = vunpack.i.h.bf16 %v975_v17  ;;  %v976_v21 = vunpack.i.l.bf16 %v975_v17  ;;  %v972_v22 = vunpack.i.h.bf16 %v970_v18  ;;  %v971_v23 = vunpack.i.l.bf16 %v970_v18  ;;  %853 = vmatprep.subr.bf16.mxu1 %v1126_v29 }
  0xd7   : > { %458 = vmatprep.subr.bf16.mxu0 %v433_v19 }
  0xd8   : > { %v360_v24 = vsel %vm359_vm9, %v971_v23, %v961_v13  ;;  %v375_v25 = vsel %vm374_vm10, %v976_v21, %v966_v11  ;;  %v362_v26 = vsel %vm359_vm9, %v962_v12, %v972_v22  ;;  %v377_v27 = vsel %vm374_vm10, %v967_v10, %v977_v20 }
  0xd9   : > { %v985_v28 = vpop.permute.xlu1 %984  ;;  %v980_v30 = vpop.permute.xlu0 %979  ;;  %v432_v31 = vpack.c.bf16 %v375_v25, %v360_v24  ;;  %v434_v32 = vpack.c.bf16 %v377_v27, %v362_v26 }
  0xda   : > { %v987_v33 = vunpack.i.h.bf16 %v985_v28  ;;  %v986_v34 = vunpack.i.l.bf16 %v985_v28  ;;  %v982_v35 = vunpack.i.h.bf16 %v980_v30  ;;  %v981_v37 = vunpack.i.l.bf16 %v980_v30 }
  0xdb   : > { %459 = vmatpush1.bf16.msra.mxu0 %v432_v31  ;;  %854 = vmatpush3.bf16.msra.mxu1 %v434_v32 }
  0xdc   : > { %v391_v38 = vsel %vm389_vm12, %v981_v37, %v982_v35  ;;  %v406_v40 = vsel %vm404_vm11, %v986_v34, %v987_v33  ;;  %855 = vmatprep.subr.bf16.mxu1 %v1126_v29  ;;  %v392_v57 = vsel %vm389_vm12, %v982_v35, %v1307_v39 }
  0xdd   : > { %v397_v41 = vpop.permute.xlu1 %396  ;;  %v382_v42 = vpop.permute.xlu0 %381  ;;  %v436_v43 = vpack.c.bf16 %v406_v40, %v391_v38 }
  0xde   : > { %v405_v44 = vsel %vm404_vm11, %v397_v41, %v986_v34  ;;  %v390_v45 = vsel %vm389_vm12, %v382_v42, %v981_v37 }
  0xdf   : > { %v435_v46 = vpack.c.bf16 %v405_v44, %v390_v45  ;;  %460 = vmatprep.subr.bf16.mxu0 %v436_v43 }
  0xe1   : > { %v416_v47 = vpop.permute.xlu1 %415  ;;  %v990_v48 = vpop.permute.xlu0 %989  ;;  %461 = vmatpush1.bf16.msra.mxu0 %v435_v46 }
  0xe2   : > { %v992_v49 = vunpack.i.h.bf16 %v990_v48  ;;  %v991_v50 = vunpack.i.l.bf16 %v990_v48 }
  0xe4   : > { %v421_v51 = vsel %vm419_vm13, %v992_v49, %v416_v47  ;;  %v420_v52 = vsel %vm419_vm13, %v991_v50, %v992_v49 }
  0xe5   : > { %v403_v53 = vpop.permute.xlu1 %402  ;;  %v418_v54 = vpop.permute.xlu0 %417  ;;  %v439_v55 = vpack.c.bf16 %v421_v51, %v421_v51  ;;  %v438_v56 = vpack.c.bf16 %v420_v52, %v420_v52 }
  0xe6   : > { %v407_v58 = vsel %vm404_vm11, %v987_v33, %v403_v53  ;;  %v422_v59 = vsel %vm419_vm13, %v416_v47, %v418_v54  ;;  %v243_v54 = vld [vmem:[%s1411_s3] sm:$0xf] }
  0xe7   : > { %v437_v60 = vpack.c.bf16 %v407_v58, %v392_v57  ;;  %825 = vmatprep.subr.msk.bf16.mxu0 %vm297_vm3, %v439_v55  ;;  %v446_v61 = vsel %vm297_vm3, %v438_v56, 0  ;;  %v440_v62 = vpack.c.bf16 %v422_v59, %v422_v59 }
  0xe8   : > { %463 = vmatpush1.bf16.msra.mxu0 %v446_v61 }
  0xe9   : > { %856 = vmatpush3.bf16.msra.mxu1 %v437_v60  ;;  %v452_v39 = vsel %vm297_vm3, %v440_v62, 0 }
  0xea   : > { %857 = vmatprep.subr.bf16.mxu1 %v1126_v29 }
  0xeb   : > { %826 = vmatmul.mubr.msk.bf16.vlgmr.msra.gmra.mrb[0].mxu0 %vm441_vm14, %v242_v63 }
  0xec   : > { %634 = vmatprep.mubr.bf16.mxu0 %v1134_v36 }
  0xed   : > { %858 = vmatpush3.bf16.msra.mxu1 %v452_v39 }
  0xee   : > { %863 = vmatprep.subr.bf16.mxu1 %v1126_v29 }
  0xf0   : > { %860 = vmatmul.mubr.msk.bf16.vlgmr.msra.gmra.mrb[0].mxu1 %vm441_vm14, %v242_v63 }
  0xf1   : > { %865 = vmatprep.mubr.msk.bf16.mxu1 %vm1135_vm5, %v1126_v29 }
  0xf6   : > { %v248_v1 = vpop.permute.xlu1 %247 }
 0x150   : > { %v254_v59 = vpop.permute.xlu0 %253 }
 0x1be   : > { %v488_v2 = vpop.f32.mrb[0].mxu0 }
 0x1bf   : > { %v489_v3 = vadd.f32 %v488_v2, %v248_v1  ;;  %v490_v4 = vpop.f32.mrb[1].mxu0 }
 0x1c0   : > { %v491_v5 = vadd.f32 %v490_v4, %v248_v1  ;;  %v492_v6 = vpop.f32.mrb[2].mxu0 }
 0x1c1   : > { %v538_v7 = vmin.f32 %v489_v3, 0.0  ;;  %v553_v36 = vsub.f32 0.0, %v489_v3  ;;  %v493_v8 = vpop.f32.mrb[3].mxu0  ;;  %vm535_vm1 = vcmp.gt.f32.partialorder %v489_v3, 0.0 }
 0x1c2   : > { %v539_v9 = vmin.f32 %v491_v5, 0.0  ;;  %v554_v10 = vsub.f32 0.0, %v491_v5  ;;  %vm536_vm2 = vcmp.gt.f32.partialorder %v491_v5, 0.0 }
 0x1c3   : > { %v541_v11 = vmul.f32 1.442695, %v538_v7  ;;  %v559_v12 = vmin.f32 %v553_v36, 0.0  ;;  %v529_v13 = vpop.f32.mrb[0].mxu1  ;;  %vm556_vm15 = vcmp.gt.f32.partialorder %v553_v36, 0.0 }
 0x1c4   : > { %v543_v29 = vmul.f32 1.442695, %v539_v9  ;;  %v560_v14 = vmin.f32 %v554_v10, 0.0  ;;  %v530_v15 = vadd.f32 %v529_v13, %v248_v1  ;;  %v861_v16 = vpop.f32.mrb[1].mxu1  ;;  %vm557_vm0 = vcmp.gt.f32.partialorder %v554_v10, 0.0 }
 0x1c5   : > { %1003 = vpow2.f32 %v541_v11  ;;  %v562_v17 = vmul.f32 1.442695, %v559_v12  ;;  %v532_v18 = vpop.f32.mrb[2].mxu1 }
 0x1c6   : > { %1005 = vpow2.f32 %v543_v29  ;;  %v564_v19 = vmul.f32 1.442695, %v560_v14  ;;  %v540_v20 = vmin.f32 %v530_v15, 0.0  ;;  %v862_v21 = vpop.f32.mrb[3].mxu1  ;;  %v555_v22 = vsub.f32 0.0, %v530_v15 }
 0x1c7   : > { %1007 = vpow2.f32 %v562_v17  ;;  %vm537_vm5 = vcmp.gt.f32.partialorder %v530_v15, 0.0 }
 0x1c8   : > { %1009 = vpow2.f32 %v564_v19  ;;  %v545_v23 = vmul.f32 1.442695, %v540_v20  ;;  %v561_v24 = vmin.f32 %v555_v22, 0.0  ;;  %vm558_vm4 = vcmp.gt.f32.partialorder %v555_v22, 0.0 }
 0x1ca   : > { %1011 = vpow2.f32 %v545_v23  ;;  %v566_v25 = vmul.f32 1.442695, %v561_v24 }
 0x1cc   : > { %1013 = vpow2.f32 %v566_v25 }
 0x1cf   : > { %v1004_v26 = vpop.eup %1003 }
 0x1d0   : > { %v1006_v27 = vpop.eup %1005  ;;  %v828_v31 = vadd.f32 -1.0, %v1004_v26 }
 0x1d1   : > { %v1008_v28 = vpop.eup %1007  ;;  %v829_v33 = vadd.f32 -1.0, %v1006_v27 }
 0x1d2   : > { %v1010_v30 = vpop.eup %1009  ;;  %v831_v32 = vadd.f32 -1.0, %v1008_v28  ;;  %v550_v42 = vsel %vm535_vm1, %v489_v3, %v828_v31 }
 0x1d3   : > { %v832_v34 = vadd.f32 -1.0, %v1010_v30  ;;  %v551_v44 = vsel %vm536_vm2, %v491_v5, %v829_v33 }
 0x1d4   : > { %v571_v35 = vsel %vm556_vm15, %v553_v36, %v831_v32  ;;  %v1012_v37 = vpop.eup %1011 }
 0x1d5   : > { %v572_v38 = vsel %vm557_vm0, %v554_v10, %v832_v34  ;;  %v577_v40 = vrot.slane %v571_v35, 4  ;;  %v830_v46 = vadd.f32 -1.0, %v1012_v37 }
 0x1d6   : > { %v578_v41 = vrot.slane %v572_v38, 4  ;;  %v1014_v43 = vpop.eup %1013 }
 0x1d7   : > { %v583_v45 = vsel %vm297_vm3, %v550_v42, %v577_v40  ;;  %v833_v49 = vadd.f32 -1.0, %v1014_v43  ;;  %v552_v55 = vsel %vm537_vm5, %v530_v15, %v830_v46 }
 0x1d8   : > { %v584_v47 = vsel %vm297_vm3, %v551_v44, %v578_v41  ;;  %v586_v48 = vpack.c.bf16 %v583_v45, %v583_v45 }
 0x1d9   : > { %v587_v50 = vpack.c.bf16 %v584_v47, %v584_v47  ;;  %v573_v52 = vsel %vm558_vm4, %v555_v22, %v833_v49 }
 0x1da   : > { %v594_v51 = vsel %vm297_vm3, %v586_v48, 0  ;;  %v579_v53 = vrot.slane %v573_v52, 4 }
 0x1db   : > { %834 = vmatprep.subr.msk.bf16.mxu0 %vm297_vm3, %v587_v50 }
 0x1dc   : > { %603 = vmatpush1.bf16.msra.mxu0 %v594_v51  ;;  %v585_v56 = vsel %vm297_vm3, %v552_v55, %v579_v53 }
 0x1dd   : > { %v588_v57 = vpack.c.bf16 %v585_v56, %v585_v56 }
 0x1df   : > { %835 = vmatmul.mubr.msk.bf16.vlgmr.msra.gmra.mrb[4].mxu0 %vm589_vm6, %v243_v54  ;;  %v600_v58 = vsel %vm297_vm3, %v588_v57, 0 }
 0x1e0   : > { %864 = vmatpush3.bf16.msra.mxu1 %v600_v58 }
 0x1e3   : > { %866 = vmatmul.mubr.msk.bf16.vlgmr.msra.gmra.mrb[4].mxu1 %vm589_vm6, %v243_v54 }
 0x2b2   : > { %v636_v60 = vpop.f32.mrb[4].mxu0 }
 0x2b3   : > { %v637_v61 = vadd.f32 %v636_v60, %v254_v59  ;;  %v638_v62 = vpop.f32.mrb[5].mxu0 }
 0x2b4   : > { %v639_v63 = vadd.f32 %v638_v62, %v254_v59  ;;  %v640_v39 = vpop.f32.mrb[6].mxu0 }
 0x2b5   : > { %v683_v0 = vand.u32 2147483647, %v637_v61  ;;  %v641_v1 = vpop.f32.mrb[7].mxu0  ;;  %vm695_vm3 = vcmp.ge.f32.partialorder %v637_v61, 0.0 }
 0x2b6   : > { %v684_v2 = vand.u32 2147483647, %v639_v63  ;;  %v677_v4 = vpop.f32.mrb[4].mxu1  ;;  %vm696_vm7 = vcmp.ge.f32.partialorder %v639_v63, 0.0 }
 0x2b7   : > { %v686_v3 = vsub.f32 0.0, %v683_v0  ;;  %v678_v6 = vadd.f32 %v677_v4, %v254_v59  ;;  %v867_v7 = vpop.f32.mrb[5].mxu1 }
 0x2b8   : > { %v687_v5 = vsub.f32 0.0, %v684_v2  ;;  %v680_v8 = vpop.f32.mrb[6].mxu1 }
 0x2b9   : > { %v689_v36 = vmul.f32 1.442695, %v686_v3  ;;  %v685_v10 = vand.u32 2147483647, %v678_v6  ;;  %v868_v11 = vpop.f32.mrb[7].mxu1  ;;  %vm697_vm8 = vcmp.ge.f32.partialorder %v678_v6, 0.0 }
 0x2ba   : > { %v691_v9 = vmul.f32 1.442695, %v687_v5 }
 0x2bb   : > { %1015 = vpow2.f32 %v689_v36  ;;  %v688_v12 = vsub.f32 0.0, %v685_v10 }
 0x2bc   : > { %1017 = vpow2.f32 %v691_v9 }
 0x2bd   : > { %v693_v13 = vmul.f32 1.442695, %v688_v12 }
 0x2bf   : > { %1019 = vpow2.f32 %v693_v13 }
 0x2c5   : > { %v1016_v29 = vpop.eup %1015 }
 0x2c6   : > { %v1018_v14 = vpop.eup %1017  ;;  %v701_v15 = vadd.f32 1.0, %v1016_v29  ;;  %v698_v20 = vsel %vm695_vm3, 1.0, %v1016_v29 }
 0x2c7   : > { %v702_v16 = vadd.f32 1.0, %v1018_v14  ;;  %v699_v23 = vsel %vm696_vm7, 1.0, %v1018_v14 }
 0x2c8   : > { %1021 = vrcp.f32 %v701_v15 }
 0x2c9   : > { %1023 = vrcp.f32 %v702_v16  ;;  %v1020_v17 = vpop.eup %1019 }
 0x2ca   : > { %v703_v18 = vadd.f32 1.0, %v1020_v17  ;;  %v700_v30 = vsel %vm697_vm8, 1.0, %v1020_v17 }
 0x2cc   : > { %1025 = vrcp.f32 %v703_v18 }
 0x2d2   : > { %v1022_v19 = vpop.eup %1021 }
 0x2d3   : > { %v1024_v21 = vpop.eup %1023  ;;  %v707_v22 = vmul.f32 %v1022_v19, %v698_v20 }
 0x2d4   : > { %v708_v24 = vmul.f32 %v1024_v21, %v699_v23 }
 0x2d5   : > { %v713_v25 = vrot.slane %v707_v22, 4 }
 0x2d6   : > { %v714_v26 = vrot.slane %v708_v24, 4  ;;  %v1026_v27 = vpop.eup %1025 }
 0x2d7   : > { %v719_v28 = vmul.f32 %v713_v25, %v637_v61  ;;  %v709_v32 = vmul.f32 %v1026_v27, %v700_v30 }
 0x2d8   : > { %v720_v31 = vmul.f32 %v714_v26, %v639_v63 }
 0x2d9   : > { %v715_v34 = vrot.slane %v709_v32, 4 }
 0x2da   : > { %v724_v33 = vcombine.low %v719_v28, %v720_v31 }
 0x2db   : > { %v721_v35 = vmul.f32 %v715_v34, %v678_v6 }
 0x2dc   : > { %726 = vst [vmem:[%s240_s15] sm:$0xff] %v724_v33 }
 0x2dd   : > { %727 = vst [vmem:[%s240_s15 + $0x8] sm:$0xf] %v721_v35 }
 0x2de   : > { %1070 = shalt.err (!%p1067_p4)
}
 0x2df   : > { %s1071_s13 = scalar_lea.hbm %s1364_s8, 192  ;;  %s1075_s25 = scalar_lea.hbm %s1413_s5, 384 }
 0x2e0   : > { %p1072_p5 = scmp.ne.s32.totalorder %s1364_s8, %s1071_s13  ;;  %p1076_p0 = scmp.lt.u32.totalorder %s1364_s8, %s1413_s5 }
 0x2e1   : > { %p1077_p1 = scmp.lt.u32.totalorder %s1075_s25, %s1071_s13  ;;  %p1079_p6 = scmp.lt.u32.totalorder %s1071_s13, %s1364_s8 }
 0x2e2   : > { %p1073_p8 = pnand %p1072_p5, %p1422_p11 }
 0x2e3   : > { %p1078_p3 = por %p1077_p1, %p1076_p0 }
 0x2e4   : > { %p1074_p9 = pneg %p1073_p8 }
 0x2e5   : > { %p1080_p12 = por %p1079_p6, %p1078_p3 }
 0x2e7   : > { %p1081_p13 = pnand %p1080_p12, %p1074_p9 }
 0x2e9   : > { %1084 = shalt.err (!%p1081_p13)
}
 0x2ea   : > { %873 = dma.vmem_to_hbm [thread:$0]  (%p1422_p11), %s1366_s16, 192, %s1364_s8, %s729_s7  }
 0x2eb PF: > { %s755_s14 = sand.u32 1, %s1111_s18   ;;  %p1423_p7 = scmp.ne.s32.totalorder %s1418_s6, 0 }
 0x2ec   : > { %p1424_p10 = scmp.ge.s32.totalorder %s1123_s21, 2  ;;  %s756_s15 = scalar_lea.sflag [#allocation4], %s755_s14 }
 0x2ee   : > { %p880_p2 = pnand %p1424_p10, %p1423_p7 }
 0x2f0   : > { %1106 = dma.done.wait (!%p880_p2), %s756_s15, 192  }
 0x2f1   : > { %1108 = vsyncadd (!%p880_p2), %s756_s15, 4294967104  ;;  %p18_p4 = scmp.ge.s32.totalorder %s1193_s24, 4   ;;  %s1425_s18 = smov %s1115_s19 }
 0x2f2   : > { %s1426_s19 = smov %s1119_s20  ;;  %s1427_s20 = smov %s1205_s27 }
 0x2f3   : > { %s1428_s21 = smov %s1193_s24  ;;  %20 = sbr.rel (!%p18_p4) target bundleno = 5 (0x5), region = 85 }
 0x2fa   :  { %761 = vsyncpa [#allocation3], 1 }
 0x2fb   :  { %763 = vsyncpa [#allocation3 + $0x1], 1 }
 0x2fc   :  { %764 = vsyncpa [#allocation4], 1 }
 0x2fd   :  { %766 = vsyncpa [#allocation4 + $0x1], 1 }

</bundles_post_ra>
